<compile_context>
chip_gen: v7x
topology: tpu7x:2x2x1
jax: 0.10.0
libtpu: 0.0.40
codegen_flags: <defaults>
</compile_context>

<pallas_src>
import functools

import jax
import jax.numpy as jnp
from jax.experimental import pallas as pl
from jax.experimental.pallas import tpu as pltpu


def _round_up(a, b):
    return (a + b - 1) // b * b


def _mlp_core(x, w1t, b1, w2_row, b2):
    # h1 = relu(x @ W1^T + b1); w1t is pre-transposed in the wrapper -> (input, hidden).
    h1 = jnp.dot(x, w1t, preferred_element_type=jnp.float32) + b1
    h1 = jnp.maximum(h1, 0.0)
    # pred_row = w2_row @ h1.T : contract hidden dim of (1, H) and (tm, H).
    # Lane-dense (1, tm) result; rhs-transposed matmul is MXU-native in Mosaic.
    pred = jax.lax.dot_general(
        w2_row, h1, (((1,), (1,)), ((), ())),
        preferred_element_type=jnp.float32)
    return pred + b2  # b2 is (1, 1); broadcasts across lanes


def _pred_kernel(x_ref, w1t_ref, b1_ref, w2_ref, b2_ref, pred_ref):
    pred_ref[...] = _mlp_core(
        x_ref[...], w1t_ref[...], b1_ref[...], w2_ref[...], b2_ref[...]
    ).astype(pred_ref.dtype)


def _pred_loss_kernel(x_ref, w1t_ref, b1_ref, w2_ref, b2_ref, y_ref,
                      pred_ref, mae_ref, mse_ref, *, valid_rows, tile_m):
    i = pl.program_id(0)

    pred = _mlp_core(
        x_ref[...], w1t_ref[...], b1_ref[...], w2_ref[...], b2_ref[...])
    pred_ref[...] = pred.astype(pred_ref.dtype)

    # Mask padded / out-of-bounds batch rows (batch lives on the 128-lane axis here).
    lane = jax.lax.broadcasted_iota(jnp.int32, (1, tile_m), 1)
    valid = (i * tile_m + lane) < valid_rows
    diff = jnp.where(valid, pred - y_ref[...], 0.0)

    # Per-tile partial sums, written to this tile's own (1, 128) output block
    # (lane-broadcast of the scalar).  Reduction + /batch happens in the wrapper,
    # so the batch grid axis stays fully "parallel".
    mse_part = jnp.sum(diff * diff, axis=-1, keepdims=True)
    mae_part = jnp.sum(jnp.abs(diff), axis=-1, keepdims=True)
    mse_ref[...] = jnp.broadcast_to(mse_part, mse_ref.shape)
    mae_ref[...] = jnp.broadcast_to(mae_part, mae_ref.shape)


def _derive_tiling(batch_padded, in_features, requested_tile_m, itemsize):
    """Pick a batch tile that amortizes pipeline overhead but fits scoped VMEM."""
    lanes_in = max(_round_up(in_features, 128), 128)      # VMEM lane padding of last dim
    row_bytes = lanes_in * itemsize                        # real VMEM bytes per x row

    vmem_cap = 64 << 20  # conservative default (v7x per-TC physical VMEM)
    try:
        info = pltpu.get_tpu_info()
        vmem_cap = int(getattr(info, "vmem_capacity_bytes", vmem_cap))
    except Exception:
        pass
    # x tile is double-buffered by the BlockSpec pipeline; keep it to a fraction of
    # VMEM (<= 24 MiB on 128 MiB chips, <= 16 MiB on v7x's 64 MiB).
    x_budget = min(vmem_cap // 4, 24 << 20)
    max_tm = max(128, (x_budget // (2 * row_bytes)) // 128 * 128)

    tm_req = max(128, (requested_tile_m // 128) * 128)
    tm = max(128, min(tm_req, max_tm, batch_padded))

    # Explicit scoped-VMEM limit: x (double-buffered) + pred/y row tiles + headroom.
    est = 2 * tm * row_bytes + 3 * 2 * tm * 8 * itemsize + (4 << 20)
    vmem_limit = int(min(max(est, 16 << 20), 48 << 20))
    return tm, vmem_limit


def mlp_regression_forward(x, params, y=None, tile_m=16384):
    """Mirrors MLPRegression.forward: pred, or (pred, mae, mse) when y is given."""
    w1, b1, w2, b2 = params["w1"], params["b1"], params["w2"], params["b2"]
    batch, in_features = x.shape
    hidden = w1.shape[0]

    # Hoist the weight transpose out of the kernel (done once by XLA, tiny array).
    w1t = w1.T  # (input, hidden)

    # Pad x only to a multiple of 128 rows (no copy at all for 128-aligned batches);
    # tm is a multiple of 128 so boundary blocks past pad_batch are handled by Pallas
    # partial-block reads + the in-kernel valid-row mask.
    pad_batch = _round_up(batch, 128)
    if pad_batch != batch:
        x = jnp.pad(x, ((0, pad_batch - batch), (0, 0)))

    tm, vmem_limit = _derive_tiling(pad_batch, in_features, tile_m, x.dtype.itemsize)
    grid_m = pl.cdiv(pad_batch, tm)
    out_cols = grid_m * tm  # outputs allocated at grid-padded width -> full, unmasked stores

    x_spec = pl.BlockSpec((tm, in_features), lambda i: (i, 0))
    w1t_spec = pl.BlockSpec((in_features, hidden), lambda i: (0, 0))
    b1_spec = pl.BlockSpec((1, hidden), lambda i: (0, 0))
    w2_spec = pl.BlockSpec((1, hidden), lambda i: (0, 0))
    b2_spec = pl.BlockSpec((1, 1), lambda i: (0, 0))
    pred_spec = pl.BlockSpec((1, tm), lambda i: (0, i))
    y_spec = pl.BlockSpec((1, tm), lambda i: (0, i))
    part_spec = pl.BlockSpec((1, 128), lambda i: (0, i))

    flops = 2 * out_cols * in_features * hidden + 2 * out_cols * hidden
    weight_bytes = (in_features * hidden + 2 * hidden + 1) * 4
    x_bytes = pad_batch * in_features * x.dtype.itemsize

    compiler_params = pltpu.CompilerParams(
        dimension_semantics=("parallel",),
        vmem_limit_bytes=vmem_limit)

    if y is None:
        cost = pl.CostEstimate(
            flops=int(flops), transcendentals=0,
            bytes_accessed=int(x_bytes + weight_bytes + out_cols * 4))
        pred_row = pl.pallas_call(
            _pred_kernel,
            out_shape=jax.ShapeDtypeStruct((1, out_cols), jnp.float32),
            grid=(grid_m,),
            in_specs=[x_spec, w1t_spec, b1_spec, w2_spec, b2_spec],
            out_specs=pred_spec,
            compiler_params=compiler_params,
            cost_estimate=cost,
        )(x, w1t, b1, w2, b2)
        return pred_row[0, :batch][:, None]

    # Lane-dense targets: (batch, 1) -> (1, out_cols) (tiny pad, zeros beyond batch).
    y_row = y.reshape(1, batch).astype(jnp.float32)
    if out_cols != batch:
        y_row = jnp.pad(y_row, ((0, 0), (0, out_cols - batch)))

    cost = pl.CostEstimate(
        flops=int(flops), transcendentals=0,
        bytes_accessed=int(x_bytes + weight_bytes + 3 * out_cols * 4 + 2 * grid_m * 128 * 4))

    kernel = functools.partial(_pred_loss_kernel, valid_rows=batch, tile_m=tm)
    pred_row, mae_part, mse_part = pl.pallas_call(
        kernel,
        out_shape=(
            jax.ShapeDtypeStruct((1, out_cols), jnp.float32),
            jax.ShapeDtypeStruct((1, grid_m * 128), jnp.float32),
            jax.ShapeDtypeStruct((1, grid_m * 128), jnp.float32),
        ),
        grid=(grid_m,),
        in_specs=[x_spec, w1t_spec, b1_spec, w2_spec, b2_spec, y_spec],
        out_specs=(pred_spec, part_spec, part_spec),
        compiler_params=compiler_params,
        cost_estimate=cost,
    )(x, w1t, b1, w2, b2, y_row)

    pred = pred_row[0, :batch][:, None]
    mae = mae_part.reshape(grid_m, 128)[:, 0].sum() / batch
    mse = mse_part.reshape(grid_m, 128)[:, 0].sum() / batch
    return pred, mae, mse


def init_params(key, input_size, hidden_size):
    # Deterministic synthetic init (analogous to weights_init's normal init).
    k1, k2, k3, k4 = jax.random.split(key, 4)
    return {
        # PyTorch nn.Linear stores weight as (out_features, in_features).
        "w1": jax.random.normal(k1, (hidden_size, input_size), jnp.float32) * 0.1,
        "b1": jax.random.normal(k2, (1, hidden_size), jnp.float32) * 0.1,
        "w2": jax.random.normal(k3, (1, hidden_size), jnp.float32) * 0.1,
        "b2": jax.random.normal(k4, (1, 1), jnp.float32) * 0.1,
    }


if __name__ == "__main__":
    input_size = 32
    hidden_size = 32

    key = jax.random.PRNGKey(0)
    kx, ky, kp = jax.random.split(key, 3)
    params = init_params(kp, input_size, hidden_size)

    def reference(x, y):
        h1 = jnp.maximum(x @ params["w1"].T + params["b1"], 0.0)
        pred = h1 @ params["w2"].T + params["b2"]
        return pred, jnp.mean(jnp.abs(pred - y)), jnp.mean((pred - y) ** 2)

    # Small case (single 128-row tile, 120 masked pad rows).
    batch = 8
    x = jax.random.normal(kx, (batch, input_size), jnp.float32)
    y = jax.random.normal(ky, (batch, 1), jnp.float32)

    pred_only = mlp_regression_forward(x, params, y=None)
    pred, mae, mse = mlp_regression_forward(x, params, y=y)
    jax.block_until_ready((pred_only, pred, mae, mse))

    pred_ref, mae_ref, mse_ref = reference(x, y)
    assert jnp.allclose(pred_only, pred_ref, atol=1e-5), "pred (no-y) mismatch"
    assert jnp.allclose(pred, pred_ref, atol=1e-5), "pred mismatch"
    assert jnp.allclose(mae, mae_ref, atol=1e-5, rtol=1e-5), "mae mismatch"
    assert jnp.allclose(mse, mse_ref, atol=1e-5, rtol=1e-5), "mse mismatch"

    # Multi-tile case: batch=600 -> padded to 640 rows, tile_m=256 -> grid of 3 with a
    # partial final block; exercises per-tile loss partials, masking and boundary reads.
    batch2 = 600
    kx2, ky2 = jax.random.split(jax.random.PRNGKey(1), 2)
    x2 = jax.random.normal(kx2, (batch2, input_size), jnp.float32)
    y2 = jax.random.normal(ky2, (batch2, 1), jnp.float32)
    pred2, mae2, mse2 = mlp_regression_forward(x2, params, y=y2, tile_m=256)
    pred2_only = mlp_regression_forward(x2, params, y=None, tile_m=256)
    jax.block_until_ready((pred2, mae2, mse2, pred2_only))

    pred2_ref, mae2_ref, mse2_ref = reference(x2, y2)
    assert jnp.allclose(pred2_only, pred2_ref, atol=1e-4), "pred (multi-tile, no-y) mismatch"
    assert jnp.allclose(pred2, pred2_ref, atol=1e-4), "pred (multi-tile) mismatch"
    assert jnp.allclose(mae2, mae2_ref, atol=1e-4, rtol=1e-4), "mae (multi-tile) mismatch"
    assert jnp.allclose(mse2, mse2_ref, atol=1e-4, rtol=1e-4), "mse (multi-tile) mismatch"

    print("KERNEL_OK")
</pallas_src>

<mosaic_0001>
module attributes {stable_mosaic.version = 11 : i64} {
  func.func @_pred_kernel(%arg0: i32, %arg1: memref<128x32xf32, #tpu.memory_space<vmem>>, %arg2: memref<32x32xf32, #tpu.memory_space<vmem>>, %arg3: memref<1x32xf32, #tpu.memory_space<vmem>>, %arg4: memref<1x32xf32, #tpu.memory_space<vmem>>, %arg5: memref<1x1xf32, #tpu.memory_space<vmem>>, %arg6: memref<1x128xf32, #tpu.memory_space<vmem>>) attributes {dimension_semantics = [#tpu.dimension_semantics<parallel>], iteration_bounds = array<i64: 1>, scalar_prefetch = 0 : i64, scratch_operands = 0 : i64, tpu.core_type = #tpu.core_type<tc>, window_params = [{transform_indices = @transform_0, window_bounds = array<i64: 128, 32>}, {pipeline_mode = #tpu.pipeline_mode<synchronous>, transform_indices = @transform_1, window_bounds = array<i64: 32, 32>}, {pipeline_mode = #tpu.pipeline_mode<synchronous>, transform_indices = @transform_2, window_bounds = array<i64: 1, 32>}, {pipeline_mode = #tpu.pipeline_mode<synchronous>, transform_indices = @transform_3, window_bounds = array<i64: 1, 32>}, {pipeline_mode = #tpu.pipeline_mode<synchronous>, transform_indices = @transform_4, window_bounds = array<i64: 1, 1>}, {transform_indices = @transform_5, window_bounds = array<i64: 1, 128>}]} {
    %c0 = arith.constant 0 : index
    %c0_0 = arith.constant 0 : index
    %0 = vector.load %arg1[%c0, %c0_0] : memref<128x32xf32, #tpu.memory_space<vmem>>, vector<128x32xf32>
    %c0_1 = arith.constant 0 : index
    %c0_2 = arith.constant 0 : index
    %1 = vector.load %arg2[%c0_1, %c0_2] : memref<32x32xf32, #tpu.memory_space<vmem>>, vector<32x32xf32>
    %c0_3 = arith.constant 0 : index
    %c0_4 = arith.constant 0 : index
    %2 = vector.load %arg3[%c0_3, %c0_4] : memref<1x32xf32, #tpu.memory_space<vmem>>, vector<1x32xf32>
    %c0_5 = arith.constant 0 : index
    %c0_6 = arith.constant 0 : index
    %3 = vector.load %arg4[%c0_5, %c0_6] : memref<1x32xf32, #tpu.memory_space<vmem>>, vector<1x32xf32>
    %c0_7 = arith.constant 0 : index
    %c0_8 = arith.constant 0 : index
    %4 = vector.load %arg5[%c0_7, %c0_8] : memref<1x1xf32, #tpu.memory_space<vmem>>, vector<1x1xf32>
    %cst = arith.constant dense<0.000000e+00> : vector<128x32xf32>
    %5 = tpu.matmul %0, %1, %cst {dimension_numbers = #tpu.dot_dimension_numbers<[1], [0], [0], [1], [0, 0, 1, 1], [], []>} : vector<128x32xf32>, vector<32x32xf32>, vector<128x32xf32> -> vector<128x32xf32>
    %6 = vector.broadcast %2 : vector<1x32xf32> to vector<128x32xf32>
    %7 = arith.addf %5, %6 : vector<128x32xf32>
    %cst_9 = arith.constant 0.000000e+00 : f32
    %8 = vector.broadcast %cst_9 : f32 to vector<128x32xf32>
    %9 = arith.maximumf %7, %8 : vector<128x32xf32>
    %cst_10 = arith.constant dense<0.000000e+00> : vector<1x128xf32>
    %10 = tpu.matmul %3, %9, %cst_10 {dimension_numbers = #tpu.dot_dimension_numbers<[1], [1], [0], [0], [0, 0, 1, 0], [], []>} : vector<1x32xf32>, vector<128x32xf32>, vector<1x128xf32> -> vector<1x128xf32>
    %11 = vector.broadcast %4 : vector<1x1xf32> to vector<1x128xf32>
    %12 = arith.addf %10, %11 : vector<1x128xf32>
    %c0_11 = arith.constant 0 : index
    %c0_12 = arith.constant 0 : index
    %13 = vector.load %arg6[%c0_11, %c0_12] : memref<1x128xf32, #tpu.memory_space<vmem>>, vector<1x128xf32>
    tpu.vector_store %arg6[%c0_11, %c0_12], %12 {strides = array<i32>} : memref<1x128xf32, #tpu.memory_space<vmem>>, vector<1x128xf32>,
    return
  }
  func.func @transform_0(%arg0: i32) -> (i32, i32) {
    %c0_i32 = arith.constant 0 : i32
    %c0_i32_0 = arith.constant 0 : i32
    return %arg0, %c0_i32 : i32, i32
  }
  func.func @transform_1(%arg0: i32) -> (i32, i32) {
    %c0_i32 = arith.constant 0 : i32
    %c0_i32_0 = arith.constant 0 : i32
    %c0_i32_1 = arith.constant 0 : i32
    return %c0_i32, %c0_i32_0 : i32, i32
  }
  func.func @transform_2(%arg0: i32) -> (i32, i32) {
    %c0_i32 = arith.constant 0 : i32
    %c0_i32_0 = arith.constant 0 : i32
    %c0_i32_1 = arith.constant 0 : i32
    return %c0_i32, %c0_i32_0 : i32, i32
  }
  func.func @transform_3(%arg0: i32) -> (i32, i32) {
    %c0_i32 = arith.constant 0 : i32
    %c0_i32_0 = arith.constant 0 : i32
    %c0_i32_1 = arith.constant 0 : i32
    return %c0_i32, %c0_i32_0 : i32, i32
  }
  func.func @transform_4(%arg0: i32) -> (i32, i32) {
    %c0_i32 = arith.constant 0 : i32
    %c0_i32_0 = arith.constant 0 : i32
    %c0_i32_1 = arith.constant 0 : i32
    return %c0_i32, %c0_i32_0 : i32, i32
  }
  func.func @transform_5(%arg0: i32) -> (i32, i32) {
    %c0_i32 = arith.constant 0 : i32
    %c0_i32_0 = arith.constant 0 : i32
    return %c0_i32, %arg0 : i32, i32
  }
}

</mosaic_0001>

<bundles_post_ra>
// kernel: tpu_custom_call.1
= control target key start
LH: loop header
LB: loop body
LE: loop exit
PB: predicated region body
PF: predicated region fallthrough
CT: control target
= control target key end

     0   :  { %s778_s0 = inlined_call_operand.vmem [shape: f32[128,32], index: 0, kind: input, shape index: {}]   ;;  %s779_s1 = inlined_call_operand.vmem [shape: f32[32,32], index: 1, kind: input, shape index: {}]   ;;  %s780_s2 = inlined_call_operand.vmem [shape: f32[1,32], index: 2, kind: input, shape index: {}]   ;;  %s781_s3 = inlined_call_operand.vmem [shape: f32[1,32], index: 3, kind: input, shape index: {}]   ;;  %s782_s4 = inlined_call_operand.<no memory space> [shape: f32[1,1], index: 4, kind: input, shape index: {}]   ;;  %s783_s5 = inlined_call_operand.hbm [shape: f32[1,128], index: 5, kind: output, shape index: {}]  }
   0x1   :  { %v10_v0 = vstv %s782_s4 }
   0x2   :  { %11 = vst [vmem:[#allocation2] sm:$0x1] %v10_v0 }
   0x3   :  { %v39_v1 = vld [vmem:[%s779_s1] sm:$0xff]  ;;  %v40_v2 = vld [vmem:[%s779_s1 + $0x8] sm:$0xff]  ;;  %v41_v3 = vld [vmem:[%s779_s1 + $0x10] sm:$0xff]  ;;  %vm52_vm0 = vcmask 261120  }
   0x4   :  { %v545_v4 = vpack.c.bf16 %v40_v2, %v39_v1  ;;  %v42_v5 = vld [vmem:[%s779_s1 + $0x18] sm:$0xff]  ;;  %v23_v6 = vld [vmem:[%s778_s0] sm:$0xff] }
   0x5   :  { %v549_v7 = vpack.c.bf16 %v42_v5, %v41_v3  ;;  %486 = vmatprep.mubr.msk.f32.mxu0 %vm52_vm0, %v23_v6 }
   0x6   :  { %546 = vmatprep.subr.bf16.mxu0 %v545_v4 }
   0x7   :  { %548 = vmatpush3.bf16.msra.mxu0 %v545_v4 }
   0x8   :  { %550 = vmatprep.subr.bf16.mxu0 %v549_v7 }
   0x9   :  { %12 = vsyncpa [#allocation4], 0  ;;  %v24_v8 = vld [vmem:[%s778_s0 + $0x8] sm:$0xff]  ;;  %v25_v9 = vld [vmem:[%s778_s0 + $0x10] sm:$0xff]  ;;  %v615_v23 = vmov 0.0|0.0   ;;  %vm616_vm1 = vmmov 0  }
   0xa   :  { %v26_v10 = vld [vmem:[%s778_s0 + $0x18] sm:$0xff]  ;;  %v27_v11 = vld [vmem:[%s778_s0 + $0x20] sm:$0xff]  ;;  %v28_v12 = vld [vmem:[%s778_s0 + $0x28] sm:$0xff]  ;;  %553 = vmatprep.subr.bf16.mxu1 %v615_v23  ;;  %v617_v24 = vmov 0.0   ;;  %v618_v26 = vmov 0   ;;  %s619_s8 = smov [#allocation3]  }
   0xb   :  { %552 = vmatpush3.bf16.msra.mxu0 %v549_v7  ;;  %v29_v13 = vld [vmem:[%s778_s0 + $0x30] sm:$0xff]  ;;  %v30_v14 = vld [vmem:[%s778_s0 + $0x38] sm:$0xff]  ;;  %v31_v15 = vld [vmem:[%s778_s0 + $0x40] sm:$0xff]  ;;  %542 = vmatprep.mubr.msk.f32.mxu1 %vm616_vm1, %v617_v24  ;;  %s399_s9 = sshll.u32 %s619_s8, 4  ;;  %s400_s9 = int_to_ptr.vmem [resolvable:$true] %s399_s9 }
   0xc   :  { %v32_v16 = vld [vmem:[%s778_s0 + $0x48] sm:$0xff]  ;;  %v33_v17 = vld [vmem:[%s778_s0 + $0x50] sm:$0xff]  ;;  %v34_v18 = vld [vmem:[%s778_s0 + $0x58] sm:$0xff]  ;;  %590 = vset.pattern.permute.xlu0 %v618_v26  ;;  %s591_s10 = scalar_lea.vmem %s400_s9, 16  ;;  %s595_s11 = scalar_lea.vmem %s400_s9, 32 }
   0xd   :  { %v35_v19 = vld [vmem:[%s778_s0 + $0x60] sm:$0xff]  ;;  %v36_v20 = vld [vmem:[%s778_s0 + $0x68] sm:$0xff]  ;;  %v37_v21 = vld [vmem:[%s778_s0 + $0x70] sm:$0xff]  ;;  %p592_p0 = scmp.ne.s32.totalorder %s400_s9, %s591_s10  ;;  %p596_p1 = scmp.lt.s32.totalorder %s400_s9, %s400_s9 }
   0xe   :  { %487 = vmatmul.mubr.msk.f32.vlgmr.msra.gmra.mrb[0].mxu0 %vm52_vm0, %v24_v8  ;;  %v38_v22 = vld [vmem:[%s778_s0 + $0x78] sm:$0xff]  ;;  %v45_v25 = vld [vmem:[#allocation2] sm:$0x1]  ;;  %vm735_vm2 = vmpackc.low %vm52_vm0, %vm52_vm0  ;;  %p597_p2 = scmp.lt.s32.totalorder %s595_s11, %s591_s10 }
   0xf   :  { %489 = vmatprep.mubr.msk.f32.mxu0 %vm52_vm0, %v25_v9  ;;  %264 = vperm.xlu0 %590, %v45_v25   ;;  %v407_v27 = vld [vmem:[%s780_s2] ss:$0 sm:$0xff] }
  0x10   :  { %p598_p3 = por %p597_p2, %p596_p1 }
  0x12   :  { %490 = vmatmul.mubr.msk.f32.gmra.mrb[2].mxu0 %vm52_vm0, %v26_v10  ;;  %p599_p4 = pnand %p598_p3, %p592_p0 }
  0x13   :  { %492 = vmatprep.mubr.msk.f32.mxu0 %vm52_vm0, %v27_v11 }
  0x16   :  { %493 = vmatmul.mubr.msk.f32.gmra.mrb[4].mxu0 %vm52_vm0, %v28_v12 }
  0x17   :  { %495 = vmatprep.mubr.msk.f32.mxu0 %vm52_vm0, %v29_v13 }
  0x1a   :  { %496 = vmatmul.mubr.msk.f32.gmra.mrb[6].mxu0 %vm52_vm0, %v30_v14 }
  0x1b   :  { %498 = vmatprep.mubr.msk.f32.mxu0 %vm52_vm0, %v31_v15 }
  0x1e   :  { %499 = vmatmul.mubr.msk.f32.gmra.mrb[8].mxu0 %vm52_vm0, %v32_v16 }
  0x1f   :  { %501 = vmatprep.mubr.msk.f32.mxu0 %vm52_vm0, %v33_v17 }
  0x22   :  { %502 = vmatmul.mubr.msk.f32.gmra.mrb[10].mxu0 %vm52_vm0, %v34_v18 }
  0x23   :  { %504 = vmatprep.mubr.msk.f32.mxu0 %vm52_vm0, %v35_v19 }
  0x26   :  { %505 = vmatmul.mubr.msk.f32.gmra.mrb[12].mxu0 %vm52_vm0, %v36_v20 }
  0x27   :  { %507 = vmatprep.mubr.msk.f32.mxu0 %vm52_vm0, %v37_v21  ;;  %v44_v21 = vld [vmem:[%s781_s3] sm:$0x1] }
  0x2a   :  { %508 = vmatmul.mubr.msk.f32.gmra.mrb[14].mxu0 %vm52_vm0, %v38_v22  ;;  %v267_v22 = vlaneseq }
  0x2c   :  { %v268_v24 = vshrl.u32 %v267_v22, 7 }
  0x2e   :  { %v269_v25 = vsub.s32 0, %v268_v24 }
  0x8e   :  { %v265_v26 = vpop.permute.xlu0 %264 }
  0xe1   :  { %v488_v28 = vpop.f32.mrb[0].mxu0 }
  0xe2   :  { %v173_v29 = vadd.f32 %v488_v28, %v407_v27  ;;  %v167_v30 = vpop.f32.mrb[1].mxu0 }
  0xe3   :  { %v168_v31 = vadd.f32 %v407_v27, %v167_v30 }
  0xe4   :  { %v247_v32 = vmax.f32 %v173_v29, 0.0 }
  0xe5   :  { %v246_v33 = vmax.f32 %v168_v31, 0.0  ;;  %v491_v34 = vpop.f32.mrb[2].mxu0 }
  0xe6   :  { %v183_v35 = vadd.f32 %v491_v34, %v407_v27  ;;  %v177_v36 = vpop.f32.mrb[3].mxu0 }
  0xe7   :  { %v554_v38 = vpack.c.bf16 %v247_v32, %v246_v33  ;;  %v178_v39 = vadd.f32 %v407_v27, %v177_v36 }
  0xe8   :  { %v249_v40 = vmax.f32 %v183_v35, 0.0 }
  0xe9   :  { %v248_v41 = vmax.f32 %v178_v39, 0.0  ;;  %556 = vmatpush3.bf16.xpose.msk.msra.mxu1 %vm735_vm2, %v554_v38  ;;  %v494_v42 = vpop.f32.mrb[4].mxu0 }
  0xea   :  { %v193_v43 = vadd.f32 %v494_v42, %v407_v27  ;;  %557 = vmatprep.subr.bf16.mxu1 %v615_v23  ;;  %v187_v44 = vpop.f32.mrb[5].mxu0 }
  0xeb   :  { %v558_v45 = vpack.c.bf16 %v249_v40, %v248_v41  ;;  %v188_v46 = vadd.f32 %v407_v27, %v187_v44 }
  0xec   :  { %v251_v47 = vmax.f32 %v193_v43, 0.0 }
  0xed   :  { %v250_v48 = vmax.f32 %v188_v46, 0.0  ;;  %v497_v49 = vpop.f32.mrb[6].mxu0 }
  0xee   :  { %v203_v50 = vadd.f32 %v497_v49, %v407_v27  ;;  %v197_v51 = vpop.f32.mrb[7].mxu0 }
  0xef   :  { %v562_v52 = vpack.c.bf16 %v251_v47, %v250_v48  ;;  %v198_v53 = vadd.f32 %v407_v27, %v197_v51 }
  0xf0   :  { %v253_v54 = vmax.f32 %v203_v50, 0.0 }
  0xf1   :  { %560 = vmatpush3.bf16.xpose.msk.msra.mxu1 %vm735_vm2, %v558_v45  ;;  %v252_v55 = vmax.f32 %v198_v53, 0.0  ;;  %v500_v56 = vpop.f32.mrb[8].mxu0 }
  0xf2   :  { %561 = vmatprep.subr.bf16.mxu1 %v615_v23  ;;  %v213_v57 = vadd.f32 %v500_v56, %v407_v27  ;;  %v207_v58 = vpop.f32.mrb[9].mxu0 }
  0xf3   :  { %v566_v59 = vpack.c.bf16 %v253_v54, %v252_v55  ;;  %v208_v60 = vadd.f32 %v407_v27, %v207_v58 }
  0xf4   :  { %v255_v61 = vmax.f32 %v213_v57, 0.0 }
  0xf5   :  { %v254_v62 = vmax.f32 %v208_v60, 0.0  ;;  %v503_v63 = vpop.f32.mrb[10].mxu0 }
  0xf6   :  { %v223_v0 = vadd.f32 %v503_v63, %v407_v27  ;;  %v217_v1 = vpop.f32.mrb[11].mxu0 }
  0xf7   :  { %v570_v2 = vpack.c.bf16 %v255_v61, %v254_v62  ;;  %v218_v3 = vadd.f32 %v407_v27, %v217_v1 }
  0xf8   :  { %v257_v4 = vmax.f32 %v223_v0, 0.0 }
  0xf9   :  { %564 = vmatpush3.bf16.xpose.msk.msra.mxu1 %vm735_vm2, %v562_v52  ;;  %v256_v5 = vmax.f32 %v218_v3, 0.0  ;;  %v506_v6 = vpop.f32.mrb[12].mxu0 }
  0xfa   :  { %565 = vmatprep.subr.bf16.mxu1 %v615_v23  ;;  %v233_v7 = vadd.f32 %v506_v6, %v407_v27  ;;  %v227_v8 = vpop.f32.mrb[13].mxu0 }
  0xfb   :  { %v574_v9 = vpack.c.bf16 %v257_v4, %v256_v5  ;;  %v228_v10 = vadd.f32 %v407_v27, %v227_v8 }
  0xfc   :  { %v259_v11 = vmax.f32 %v233_v7, 0.0 }
  0xfd   :  { %v258_v12 = vmax.f32 %v228_v10, 0.0  ;;  %v509_v13 = vpop.f32.mrb[14].mxu0 }
  0xfe   :  { %v243_v14 = vadd.f32 %v509_v13, %v407_v27  ;;  %v237_v15 = vpop.f32.mrb[15].mxu0 }
  0xff   :  { %v578_v16 = vpack.c.bf16 %v259_v11, %v258_v12  ;;  %v238_v17 = vadd.f32 %v407_v27, %v237_v15  ;;  %v270_v27 = vrot.slane %v265_v26, %v269_v25 }
 0x100   :  { %v261_v18 = vmax.f32 %v243_v14, 0.0 }
 0x101   :  { %568 = vmatpush3.bf16.xpose.msk.msra.mxu1 %vm735_vm2, %v566_v59  ;;  %v260_v19 = vmax.f32 %v238_v17, 0.0 }
 0x102   :  { %569 = vmatprep.subr.bf16.mxu1 %v615_v23 }
 0x103   :  { %v582_v20 = vpack.c.bf16 %v261_v18, %v260_v19 }
 0x109   :  { %572 = vmatpush3.bf16.xpose.msk.msra.mxu1 %vm735_vm2, %v570_v2 }
 0x10a   :  { %573 = vmatprep.subr.bf16.mxu1 %v615_v23 }
 0x111   :  { %576 = vmatpush3.bf16.xpose.msk.msra.mxu1 %vm735_vm2, %v574_v9 }
 0x112   :  { %577 = vmatprep.subr.bf16.mxu1 %v615_v23 }
 0x119   :  { %580 = vmatpush3.bf16.xpose.msk.msra.mxu1 %vm735_vm2, %v578_v16 }
 0x11a   :  { %581 = vmatprep.subr.bf16.mxu1 %v615_v23 }
 0x121   :  { %584 = vmatpush3.bf16.xpose.msk.msra.mxu1 %vm735_vm2, %v582_v20 }
 0x128   :  { %543 = vmatmul.mubr.msk.f32.vlgmr.msra.gmra.mrb[0].mxu1 %vm52_vm0, %v44_v21 }
 0x1fb   :  { %v388_v28 = vpop.f32.mrb[0].mxu1 }
 0x1fc   :  { %v389_v29 = vadd.f32 %v388_v28, %v270_v27  ;;  %v544_v30 = vpop.f32.mrb[1].mxu1 }
 0x1fe   :  { %392 = vst [vmem:[#allocation3] sm:$0x1] %v389_v29 }
 0x1ff   :  { %602 = shalt.err (!%p599_p4)
}
 0x200   :  { %s603_s13 = scalar_lea.hbm %s783_s5, 16 }
 0x201   :  { %p604_p5 = scmp.ne.s32.totalorder %s783_s5, %s603_s13  ;;  %p607_p6 = scmp.lt.u32.totalorder %s603_s13, %s783_s5 }
 0x203   :  { %p609_p7 = pnand %p607_p6, %p604_p5 }
 0x205   :  { %612 = shalt.err (!%p609_p7)
}
 0x206   :  { %402 = dma.vmem_to_hbm [thread:$0]  %s400_s9, 16, %s783_s5, [#allocation4]  }
 0x207   :  { %613 = dma.done.wait [#allocation4], 16  }
 0x208   :  { %614 = vsyncadd [#allocation4], 4294967280 }
 0x209   :  { %406 = vsyncpa [#allocation4], 1 }

</bundles_post_ra>
